<compile_context>
chip_gen: v7x
topology: tpu7x:2x2x1
jax: 0.10.0
libtpu: 0.0.40
codegen_flags: <defaults>
</compile_context>

<pallas_src>
import math

import jax
import jax.numpy as jnp
from jax.experimental import pallas as pl
from jax.experimental.pallas import tpu as pltpu

_LANES = 128
_MAX_BLOCK_ROWS = 1024   # (1024,128) f32 = 512 KiB/block; fits every generation easily
_NUM_SLICES = 2          # leading "parallel" grid axis (dual TensorCore on v7x)


# ----------------------------------------------------------------------------
# Pallas kernel: per-slice sum_i  neg_half_dfp1 * log(c + r_i^2),
#                r_i = y_i - (t0 + t1 * x_i)
# ----------------------------------------------------------------------------
def _studentt_sum_kernel(params_ref, x_ref, y_ref, out_ref, acc_ref):
    k = pl.program_id(1)

    @pl.when(k == 0)
    def _():
        acc_ref[...] = jnp.zeros_like(acc_ref)

    t0 = params_ref[0]             # theta_0 (intercept)
    t1 = params_ref[1]             # theta_1 (slope)
    c = params_ref[2]              # df * scale^2
    neg_half_dfp1 = params_ref[3]  # -0.5 * (df + 1)

    r = y_ref[...] - (t0 + t1 * x_ref[...])
    # Elementwise accumulation on the VPU; one EUP log per element. The
    # per-element constant (0.5*(df+1)*log(c) - log_norm) is added outside.
    acc_ref[...] += neg_half_dfp1 * jnp.log(c + r * r)

    @pl.when(k == pl.num_programs(1) - 1)
    def _():
        # Single sublane reduction per slice; the wrapper sums lanes + slices.
        out_ref[...] = jnp.zeros_like(out_ref)
        out_ref[0:1, :] = jnp.sum(acc_ref[...], axis=0, keepdims=True)


def studentt_logprob_sum(xs, ys, theta_0, theta_1, scale, df):
    xs = xs.reshape(-1).astype(jnp.float32)
    ys = ys.reshape(-1).astype(jnp.float32)
    n = xs.shape[0]

    theta_0 = theta_0.astype(jnp.float32)
    theta_1 = theta_1.astype(jnp.float32)
    scale = scale.astype(jnp.float32)
    df = df.astype(jnp.float32)

    # --- tiling: pad N up to _NUM_SLICES * steps * block_rows rows of 128 ----
    rows = -(-n // _LANES)
    rows_per_slice = -(-rows // _NUM_SLICES)
    block_rows = min(_MAX_BLOCK_ROWS, ((rows_per_slice + 7) // 8) * 8)
    block_rows = max(block_rows, 8)
    steps = -(-rows // (_NUM_SLICES * block_rows))
    rows_padded = _NUM_SLICES * steps * block_rows
    pad = rows_padded * _LANES - n
    if pad:
        xs = jnp.pad(xs, (0, pad))
        ys = jnp.pad(ys, (0, pad))
    x2 = xs.reshape(rows_padded, _LANES)
    y2 = ys.reshape(rows_padded, _LANES)

    # --- scalar prefetch params (hoisted per-element math) -------------------
    c = df * scale * scale
    neg_half_dfp1 = -0.5 * (df + 1.0)
    params = jnp.stack([theta_0, theta_1, c, neg_half_dfp1])

    def in_map(s, k, _params, steps=steps):
        return (s * steps + k, 0)

    out = pl.pallas_call(
        _studentt_sum_kernel,
        out_shape=jax.ShapeDtypeStruct((_NUM_SLICES * 8, _LANES), jnp.float32),
        grid_spec=pltpu.PrefetchScalarGridSpec(
            num_scalar_prefetch=1,
            grid=(_NUM_SLICES, steps),
            in_specs=[
                pl.BlockSpec((block_rows, _LANES), in_map),
                pl.BlockSpec((block_rows, _LANES), in_map),
            ],
            out_specs=pl.BlockSpec((8, _LANES), lambda s, k, _params: (s, 0)),
            scratch_shapes=[pltpu.VMEM((block_rows, _LANES), jnp.float32)],
        ),
        compiler_params=pltpu.CompilerParams(
            dimension_semantics=("parallel", "arbitrary")),
    )(params, x2, y2)

    kernel_sum = jnp.sum(out)

    # Scalar Student-T normalizer (lgamma has no Mosaic lowering; scalars only).
    log_norm = (jnp.log(scale) + 0.5 * jnp.log(df)
                + 0.5 * jnp.float32(math.log(math.pi))
                + jax.lax.lgamma(0.5 * df) - jax.lax.lgamma(0.5 * (df + 1.0)))
    # Per-real-element constant folded out of the kernel:
    #   lp_i = neg_half_dfp1*log(c + r_i^2) + [0.5*(df+1)*log(c) - log_norm]
    per_elem_const = 0.5 * (df + 1.0) * jnp.log(c) - log_norm
    # Padded elements have x = y = 0 -> r = -theta_0; subtract their kernel term.
    pad_lp = neg_half_dfp1 * jnp.log(c + theta_0 * theta_0)

    return kernel_sum - pad * pad_lp + n * per_elem_const


# ----------------------------------------------------------------------------
# Plain-JAX glue: prior log-densities and the parameter "distribution modules"
# ----------------------------------------------------------------------------
def _normal_logpdf(x, mu, sd):
    return -0.5 * ((x - mu) / sd) ** 2 - jnp.log(sd) - 0.5 * jnp.log(2.0 * jnp.pi)


def _halfnormal_logpdf(x, scale):
    # matches torch.distributions.HalfNormal: Normal(0, scale).log_prob(x) + log(2)
    return _normal_logpdf(x, 0.0, scale) + jnp.log(2.0)


def _exponential_logpdf(x, rate):
    return jnp.log(rate) - rate * x


class RobustRegression:
    """JAX/Pallas port of the PyTorch RobustRegression module."""
    # TODO(synk): the exact Normal/HalfNormal/Exponential wrapper classes from
    # examples/robust_linear_regression.py are not provided; standard
    # exp-transform + log-det-Jacobian reparameterization semantics are assumed.

    def __init__(self, reg_prior_mu, reg_prior_sd, noise_prior_scale, rate_prior):
        self.reg_prior_mu = jnp.float32(reg_prior_mu)
        self.reg_prior_sd = jnp.float32(reg_prior_sd)
        self.noise_prior_scale = jnp.float32(noise_prior_scale)
        self.rate_prior = jnp.float32(rate_prior)
        # Deterministic parameter initialization (shapes (1,), as in __init__).
        self.theta_0_raw = jnp.array([0.10], jnp.float32)
        self.theta_1_raw = jnp.array([0.25], jnp.float32)
        self.theta_2_raw = jnp.array([-0.40], jnp.float32)  # exp -> positive scale
        self.theta_3_raw = jnp.array([1.20], jnp.float32)   # exp -> positive dof

    def _latents(self):
        theta_0 = self.theta_0_raw
        theta_0_contrib = jnp.sum(_normal_logpdf(theta_0, self.reg_prior_mu, self.reg_prior_sd))
        theta_1 = self.theta_1_raw
        theta_1_contrib = jnp.sum(_normal_logpdf(theta_1, self.reg_prior_mu, self.reg_prior_sd))
        theta_2 = jnp.exp(self.theta_2_raw)
        theta_2_contrib = (jnp.sum(_halfnormal_logpdf(theta_2, self.noise_prior_scale))
                           + jnp.sum(self.theta_2_raw))  # log|d exp / dx|
        theta_3 = jnp.exp(self.theta_3_raw)
        theta_3_contrib = (jnp.sum(_exponential_logpdf(theta_3, self.rate_prior))
                           + jnp.sum(self.theta_3_raw))  # log|d exp / dx|
        constraint = theta_0_contrib + theta_1_contrib + theta_2_contrib + theta_3_contrib
        return theta_0[0], theta_1[0], theta_2[0], theta_3[0], constraint

    def forward(self, xs, ys):
        t0, t1, t2, t3, constraint_contrib = self._latents()
        data_lp = studentt_logprob_sum(xs, ys, t0, t1, t2, t3)
        return constraint_contrib + data_lp

    def forward_reference(self, xs, ys):
        """Pure-JAX reference (no Pallas) for correctness checking."""
        t0, t1, t2, t3, constraint_contrib = self._latents()
        y_mu = t0 + t1 * xs
        z = (ys - y_mu) / t2
        log_norm = (jnp.log(t2) + 0.5 * jnp.log(t3) + 0.5 * jnp.log(jnp.pi)
                    + jax.lax.lgamma(0.5 * t3) - jax.lax.lgamma(0.5 * (t3 + 1.0)))
        lp = -0.5 * (t3 + 1.0) * jnp.log1p(z * z / t3) - log_norm
        return constraint_contrib + jnp.sum(lp)


if __name__ == "__main__":
    key = jax.random.PRNGKey(0)
    kx, kn = jax.random.split(key)

    # Deliberately NOT a multiple of 1024 to exercise the padding-correction path.
    N = 3000
    xs = jax.random.uniform(kx, (N,), jnp.float32, minval=-2.0, maxval=2.0)
    ys = 1.5 + 0.8 * xs + 0.3 * jax.random.normal(kn, (N,), jnp.float32)

    model = RobustRegression(reg_prior_mu=0.0, reg_prior_sd=10.0,
                             noise_prior_scale=1.0, rate_prior=1.0)

    out = jax.block_until_ready(model.forward(xs, ys))
    ref = jax.block_until_ready(model.forward_reference(xs, ys))

    assert jnp.isfinite(out), "kernel produced non-finite output"
    assert jnp.allclose(out, ref, rtol=2e-4, atol=5e-2), (out, ref)

    print("KERNEL_OK")
</pallas_src>

<mosaic_0001>
module attributes {stable_mosaic.version = 11 : i64} {
  func.func @_studentt_sum_kernel(%arg0: i32, %arg1: i32, %arg2: memref<4xf32, #tpu.memory_space<smem>>, %arg3: memref<16x128xf32, #tpu.memory_space<vmem>>, %arg4: memref<16x128xf32, #tpu.memory_space<vmem>>, %arg5: memref<8x128xf32, #tpu.memory_space<vmem>>, %arg6: memref<16x128xf32, #tpu.memory_space<vmem>>) attributes {dimension_semantics = [#tpu.dimension_semantics<parallel>, #tpu.dimension_semantics<arbitrary>], iteration_bounds = array<i64: 2, 1>, scalar_prefetch = 1 : i64, scratch_operands = 1 : i64, tpu.core_type = #tpu.core_type<tc>, window_params = [{transform_indices = @transform_0, window_bounds = array<i64: 16, 128>}, {transform_indices = @transform_1, window_bounds = array<i64: 16, 128>}, {transform_indices = @transform_2, window_bounds = array<i64: 8, 128>}]} {
    %c0_i32 = arith.constant 0 : i32
    %0 = arith.cmpi eq, %arg1, %c0_i32 : i32
    %1 = arith.extui %0 : i1 to i32
    %c0_i32_0 = arith.constant 0 : i32
    %2 = arith.cmpi ne, %1, %c0_i32_0 : i32
    scf.if %2 {
      %cst = arith.constant 0.000000e+00 : f32
      %26 = vector.broadcast %cst : f32 to vector<16x128xf32>
      %c0_11 = arith.constant 0 : index
      %c0_12 = arith.constant 0 : index
      %27 = vector.load %arg6[%c0_11, %c0_12] : memref<16x128xf32, #tpu.memory_space<vmem>>, vector<16x128xf32>
      tpu.vector_store %arg6[%c0_11, %c0_12], %26 {strides = array<i32>} : memref<16x128xf32, #tpu.memory_space<vmem>>, vector<16x128xf32>,
    } else {
    }
    %c0 = arith.constant 0 : index
    %3 = memref.load %arg2[%c0] : memref<4xf32, #tpu.memory_space<smem>>
    %c1 = arith.constant 1 : index
    %4 = memref.load %arg2[%c1] : memref<4xf32, #tpu.memory_space<smem>>
    %c2 = arith.constant 2 : index
    %5 = memref.load %arg2[%c2] : memref<4xf32, #tpu.memory_space<smem>>
    %c3 = arith.constant 3 : index
    %6 = memref.load %arg2[%c3] : memref<4xf32, #tpu.memory_space<smem>>
    %c0_1 = arith.constant 0 : index
    %c0_2 = arith.constant 0 : index
    %7 = vector.load %arg4[%c0_1, %c0_2] : memref<16x128xf32, #tpu.memory_space<vmem>>, vector<16x128xf32>
    %c0_3 = arith.constant 0 : index
    %c0_4 = arith.constant 0 : index
    %8 = vector.load %arg3[%c0_3, %c0_4] : memref<16x128xf32, #tpu.memory_space<vmem>>, vector<16x128xf32>
    %9 = vector.broadcast %4 : f32 to vector<16x128xf32>
    %10 = arith.mulf %9, %8 : vector<16x128xf32>
    %11 = vector.broadcast %3 : f32 to vector<16x128xf32>
    %12 = arith.addf %11, %10 : vector<16x128xf32>
    %13 = arith.subf %7, %12 : vector<16x128xf32>
    %c0_5 = arith.constant 0 : index
    %c0_6 = arith.constant 0 : index
    %14 = vector.load %arg6[%c0_5, %c0_6] : memref<16x128xf32, #tpu.memory_space<vmem>>, vector<16x128xf32>
    %15 = arith.mulf %13, %13 : vector<16x128xf32>
    %16 = vector.broadcast %5 : f32 to vector<16x128xf32>
    %17 = arith.addf %16, %15 : vector<16x128xf32>
    %18 = math.log %17 : vector<16x128xf32>
    %19 = vector.broadcast %6 : f32 to vector<16x128xf32>
    %20 = arith.mulf %19, %18 : vector<16x128xf32>
    %21 = arith.addf %14, %20 : vector<16x128xf32>
    %c0_7 = arith.constant 0 : index
    %c0_8 = arith.constant 0 : index
    %22 = vector.load %arg6[%c0_7, %c0_8] : memref<16x128xf32, #tpu.memory_space<vmem>>, vector<16x128xf32>
    tpu.vector_store %arg6[%c0_7, %c0_8], %21 {strides = array<i32>} : memref<16x128xf32, #tpu.memory_space<vmem>>, vector<16x128xf32>,
    %c0_i32_9 = arith.constant 0 : i32
    %23 = arith.cmpi eq, %arg1, %c0_i32_9 : i32
    %24 = arith.extui %23 : i1 to i32
    %c0_i32_10 = arith.constant 0 : i32
    %25 = arith.cmpi ne, %24, %c0_i32_10 : i32
    scf.if %25 {
      %cst = arith.constant 0.000000e+00 : f32
      %26 = vector.broadcast %cst : f32 to vector<8x128xf32>
      %c0_11 = arith.constant 0 : index
      %c0_12 = arith.constant 0 : index
      %27 = vector.load %arg5[%c0_11, %c0_12] : memref<8x128xf32, #tpu.memory_space<vmem>>, vector<8x128xf32>
      tpu.vector_store %arg5[%c0_11, %c0_12], %26 {strides = array<i32>} : memref<8x128xf32, #tpu.memory_space<vmem>>, vector<8x128xf32>,
      %c0_13 = arith.constant 0 : index
      %c0_14 = arith.constant 0 : index
      %28 = vector.load %arg6[%c0_13, %c0_14] : memref<16x128xf32, #tpu.memory_space<vmem>>, vector<16x128xf32>
      %cst_15 = arith.constant dense<0.000000e+00> : vector<128xf32>
      %29 = vector.multi_reduction <add>, %28, %cst_15 [0] : vector<16x128xf32> to vector<128xf32>
      %30 = vector.shape_cast %29 : vector<128xf32> to vector<1x128xf32>
      %c0_16 = arith.constant 0 : index
      %c0_17 = arith.constant 0 : index
      %31 = vector.load %arg5[%c0_16, %c0_17] : memref<8x128xf32, #tpu.memory_space<vmem>>, vector<1x128xf32>
      tpu.vector_store %arg5[%c0_16, %c0_17], %30 {strides = array<i32>} : memref<8x128xf32, #tpu.memory_space<vmem>>, vector<1x128xf32>,
    } else {
    }
    return
  }
  func.func @transform_0(%arg0: i32, %arg1: i32, %arg2: memref<4xf32, #tpu.memory_space<smem>>) -> (i32, i32) {
    %c1_i32 = arith.constant 1 : i32
    %0 = arith.muli %arg0, %c1_i32 : i32
    %1 = arith.addi %0, %arg1 : i32
    %c0_i32 = arith.constant 0 : i32
    %c0_i32_0 = arith.constant 0 : i32
    return %1, %c0_i32 : i32, i32
  }
  func.func @transform_1(%arg0: i32, %arg1: i32, %arg2: memref<4xf32, #tpu.memory_space<smem>>) -> (i32, i32) {
    %c1_i32 = arith.constant 1 : i32
    %0 = arith.muli %arg0, %c1_i32 : i32
    %1 = arith.addi %0, %arg1 : i32
    %c0_i32 = arith.constant 0 : i32
    %c0_i32_0 = arith.constant 0 : i32
    return %1, %c0_i32 : i32, i32
  }
  func.func @transform_2(%arg0: i32, %arg1: i32, %arg2: memref<4xf32, #tpu.memory_space<smem>>) -> (i32, i32) {
    %c0_i32 = arith.constant 0 : i32
    %c0_i32_0 = arith.constant 0 : i32
    return %arg0, %c0_i32 : i32, i32
  }
}

</mosaic_0001>

<bundles_post_ra>
// kernel: tpu_custom_call.1
= control target key start
LH: loop header
LB: loop body
LE: loop exit
PB: predicated region body
PF: predicated region fallthrough
CT: control target
= control target key end

     0   :  { %s937_s0 = inlined_call_operand.hbm [shape: f32[4], index: 0, kind: input, shape index: {}]   ;;  %s938_s1 = inlined_call_operand.hbm [shape: f32[32,128], index: 1, kind: input, shape index: {}]   ;;  %s939_s2 = inlined_call_operand.hbm [shape: f32[32,128], index: 2, kind: input, shape index: {}]   ;;  %s940_s3 = inlined_call_operand.hbm [shape: f32[16,128], index: 3, kind: output, shape index: {}]  }
   0x1   :  { %s498_s14 = scalar_lea.hbm %s937_s0, 16 }
   0x2   :  { %p499_p0 = scmp.ne.s32.totalorder %s937_s0, %s498_s14  ;;  %p502_p1 = scmp.lt.u32.totalorder %s498_s14, %s937_s0 }
   0x4   :  { %p504_p2 = pnand %p502_p1, %p499_p0 }
   0x6   :  { %507 = shalt.err (!%p504_p2)  }
   0x7   :  { %s658_s19 = smov [#allocation4]  }
   0x8   :  { %9 = dma.hbm_to_smem %s937_s0, 16, %s658_s19, [#allocation3] }
   0x9   :  { %620 = dma.done.wait [#allocation3], 16 }
   0xa   :  { %621 = vsyncadd [#allocation3], 4294967280 }
   0xb   :  { %11 = sfence }
   0xc   :  { %12 = vsyncpa [#allocation6], 0 }
   0xd   :  { %14 = vsyncpa [#allocation6 + $0x1], 0 }
   0xe   :  { %15 = vsyncpa [#allocation9], 0 }
   0xf   :  { %17 = vsyncpa [#allocation9 + $0x1], 0 }
  0x10   :  { %18 = vsyncpa [#allocation7], 0 }
  0x11   :  { %20 = vsyncpa [#allocation7 + $0x1], 0  ;;  %s697_s22 = smov 0   ;;  %s699_s23 = smov 0  }
  0x12   :  { %s701_s24 = smov 0   ;;  %s703_s25 = smov 0  }
  0x13   :  { %s705_s26 = smov 0   ;;  %s707_s0 = smov 0  }
  0x14 LB: > { %s400_s27 = sadd.s32 4294967295, %s656_s0   ;;  %s401_s28 = sadd.s32 4294967294, %s656_s0   ;;  %s656_s0 = sphi %s707_s0, %s26_s0   ;;  %s652_s26 = sphi %s705_s26, %s958_s26   ;;  %s648_s25 = sphi %s703_s25, %s957_s25   ;;  %s644_s24 = sphi %s701_s24, %s956_s24   ;;  %s640_s23 = sphi %s699_s23, %s955_s23   ;;  %s636_s22 = sphi %s697_s22, %s954_s22  }
  0x15   : > { %s38_s29 = sadd.s32 1, %s652_s26  ;;  %s47_s30 = sadd.s32 1, %s644_s24 }
  0x16   : > { %p40_p3 = scmp.ge.s32.totalorder %s38_s29, 2  ;;  %p54_p4 = scmp.ne.s32.totalorder %s644_s24, %s640_s23 }
  0x17   : > { %p55_p5 = scmp.eq.s32.totalorder %s656_s0, 0  ;;  %p60_p6 = scmp.ne.s32.totalorder %s640_s23, %s636_s22 }
  0x18   : > { %s960_s29 = smov (%p40_p3, %s38_s29), 0  ;;  %p61_p8 = scmp.eq.s32.totalorder %s400_s27, 0 }
  0x19   : > { %p738_p7 = por %p55_p5, %p54_p4  ;;  %s44_s5 = ssub.s32 %s652_s26, %s960_s29 }
  0x1a   : > { %p112_p9 = scmp.eq.s32.totalorder %s400_s27, 1  ;;  %p45_p10 = scmp.eq.s32.totalorder %s44_s5, 0 }
  0x1b   : > { %p744_p11 = por %p61_p8, %p60_p6  ;;  %p118_p13 = scmp.eq.s32.totalorder %s401_s28, 1 }
  0x1c   : > { %p748_p12 = por %p112_p9, %p54_p4  ;;  %p440_p2 = scmp.lt.s32.totalorder %s656_s0, 2 }
  0x1d   : > { %s944_s6 = scalar_select %p744_p11, 1, 0 }
  0x1e   : > { %s945_s7 = scalar_select %p748_p12, 1, 0 }
  0x1f   : > { %s753_s8 = scalar_select %p45_p10, %s644_s24, %s47_s30  }
  0x20   : > { %p755_p0 = por %p118_p13, %p60_p6  ;;  %s762_s10 = sand.u32 1, %s644_s24  }
  0x21   : > { %s404_s11 = sshll.u32 %s762_s10, 4  ;;  %s421_s12 = sshll.u32 %s652_s26, 8 }
  0x22   : > { %s946_s9 = scalar_select %p755_p0, 1, 0 }
  0x23   : > { %s771_s15 = scalar_lea.hbm %s938_s1, %s421_s12  ;;  %s142_s16 = scalar_lea.vmem [#allocation5], %s404_s11 }
  0x24   : > { %s150_s17 = sshll.u32 %s142_s16, 4  ;;  %p779_p3 = pnand %p440_p2, %p738_p7  ;;  %s775_s17 = int_to_ptr.vmem [resolvable:$true] %s150_s17 }
  0x25   : > { %s139_s19 = scalar_lea.sflag [#allocation6], %s762_s10  ;;  %s508_s20 = scalar_lea.hbm %s771_s15, 256 }
  0x26   : > { %p509_p5 = scmp.ne.s32.totalorder %s771_s15, %s508_s20  ;;  %p510_p6 = pneg %p779_p3 }
  0x27   : > { %s513_s28 = scalar_lea.hbm %s938_s1, 512  ;;  %p514_p7 = scmp.lt.u32.totalorder %s771_s15, %s938_s1 }
  0x28   : > { %p511_p8 = pnand %p510_p6, %p509_p5  ;;  %p515_p10 = scmp.lt.u32.totalorder %s513_s28, %s508_s20 }
  0x29   : > { %p517_p2 = scmp.lt.u32.totalorder %s508_s20, %s771_s15 }
  0x2a   : > { %p512_p9 = pneg %p511_p8  ;;  %p516_p13 = por %p515_p10, %p514_p7 }
  0x2c   : > { %p518_p1 = por %p517_p2, %p516_p13 }
  0x2e   : > { %p519_p4 = pnand %p518_p1, %p512_p9 }
  0x30   : > { %522 = shalt.err (!%p519_p4)
}
  0x31   : > { %s523_s5 = scalar_lea.vmem %s775_s17, 256  ;;  %s659_s13 = smov [#allocation5]  }
  0x32   : > { %p524_p5 = scmp.ne.s32.totalorder %s775_s17, %s523_s5  ;;  %s528_s14 = sshll.u32 %s659_s13, 4  ;;  %s529_s14 = int_to_ptr.vmem [resolvable:$false] %s528_s14 }
  0x33   : > { %s530_s16 = scalar_lea.vmem %s529_s14, 512  ;;  %p531_p12 = scmp.lt.s32.totalorder %s775_s17, %s529_s14 }
  0x34   : > { %p526_p8 = pnand %p524_p5, %p510_p6  ;;  %p532_p7 = scmp.lt.s32.totalorder %s530_s16, %s523_s5 }
  0x36   : > { %p527_p0 = pneg %p526_p8  ;;  %p533_p10 = por %p532_p7, %p531_p12 }
  0x38   : > { %p534_p13 = pnand %p533_p10, %p527_p0 }
  0x3a   : > { %537 = shalt.err (!%p534_p13)
}
  0x3b   : > { %s660_s20 = smov 128   ;;  %s661_s21 = smov 8  }
  0x3c   : > { %432 = dma.hbm_to_vmem [thread:$0]  (!%p779_p3), %s771_s15, 256, %s775_s17, %s139_s19, %s660_s20, %s660_s20, %s661_s21  }
  0x3d   : > { %p180_p12 = scmp.lt.s32.totalorder %s656_s0, 3  ;;  %s821_s30 = scalar_lea.hbm %s939_s2, %s421_s12 }
  0x3e   : > { %p948_p0 = scmp.ge.s32.totalorder %s656_s0, 1  ;;  %s164_s5 = scalar_lea.vmem [#allocation8], %s404_s11 }
  0x3f   : > { %s172_s13 = sshll.u32 %s164_s5, 4  ;;  %s161_s15 = scalar_lea.sflag [#allocation9], %s762_s10  ;;  %s831_s13 = int_to_ptr.vmem [resolvable:$true] %s172_s13 }
  0x40   : > { %p825_p1 = pnand %p948_p0, %p180_p12  ;;  %s538_s17 = scalar_lea.hbm %s821_s30, 256 }
  0x41   : > { %p539_p4 = scmp.ne.s32.totalorder %s821_s30, %s538_s17  ;;  %s543_s14 = scalar_lea.hbm %s939_s2, 512 }
  0x42   : > { %p544_p5 = scmp.lt.u32.totalorder %s821_s30, %s939_s2  ;;  %p545_p8 = scmp.lt.u32.totalorder %s543_s14, %s538_s17 }
  0x43   : > { %p541_p9 = pnand %p539_p4, %p510_p6  ;;  %p547_p10 = scmp.lt.u32.totalorder %s538_s17, %s821_s30 }
  0x44   : > { %p546_p7 = por %p545_p8, %p544_p5 }
  0x45   : > { %p542_p2 = pneg %p541_p9 }
  0x46   : > { %p548_p13 = por %p547_p10, %p546_p7 }
  0x48   : > { %p549_p12 = pnand %p548_p13, %p542_p2 }
  0x4a   : > { %552 = shalt.err (!%p549_p12)
}
  0x4b   : > { %s553_s11 = scalar_lea.vmem %s831_s13, 256  ;;  %s662_s28 = smov [#allocation8]  }
  0x4c   : > { %p554_p0 = scmp.ne.s32.totalorder %s831_s13, %s553_s11  ;;  %s558_s5 = sshll.u32 %s662_s28, 4  ;;  %s559_s5 = int_to_ptr.vmem [resolvable:$false] %s558_s5 }
  0x4d   : > { %s560_s12 = scalar_lea.vmem %s559_s5, 512  ;;  %p561_p11 = scmp.lt.s32.totalorder %s831_s13, %s559_s5 }
  0x4e   : > { %p556_p4 = pnand %p554_p0, %p510_p6  ;;  %p562_p5 = scmp.lt.s32.totalorder %s560_s12, %s553_s11 }
  0x50   : > { %p557_p9 = pneg %p556_p4  ;;  %p563_p8 = por %p562_p5, %p561_p11 }
  0x52   : > { %p564_p7 = pnand %p563_p8, %p557_p9 }
  0x54   : > { %567 = shalt.err (!%p564_p7)
}
  0x55   : > { %435 = dma.hbm_to_vmem [thread:$0]  (!%p779_p3), %s821_s30, 256, %s831_s13, %s161_s15, %s660_s20, %s660_s20, %s661_s21  }
  0x56   : > { %184 = sbr.rel (%p825_p1) target bundleno = 158 (0x9e), region = 28  ;;  %s865_s17 = sand.u32 (!%p825_p1), 1, %s640_s23  }
  0x57   : > { %s411_s19 = sshll.u32 (!%p825_p1), %s865_s17, 4  ;;  %s187_s14 = scalar_lea.sflag (!%p825_p1), [#allocation6], %s865_s17 }
  0x58   : > { %s190_s18 = scalar_lea.vmem (!%p825_p1), [#allocation5], %s411_s19  ;;  %p950_p11 = scmp.ne.s32.totalorder (!%p825_p1), %s944_s6, 0 }
  0x5d   : > { %623 = dma.done.wait (%p950_p11), %s187_s14, 256  }
  0x5e   : > { %625 = vsyncadd (%p950_p11), %s187_s14, 4294967040  ;;  %s196_s10 = scalar_lea.sflag [#allocation9], %s865_s17  ;;  %s199_s20 = scalar_lea.vmem [#allocation8], %s411_s19 }
  0x5f   : > { %627 = dma.done.wait (%p950_p11), %s196_s10, 256  }
  0x60   : > { %629 = vsyncadd (%p950_p11), %s196_s10, 4294967040  ;;  %s413_s21 = sshll.u32 %s865_s17, 3  ;;  %s235_s30 = sld [smem:[#allocation4]]  ;;  %v663_v0 = vmov 0.0   ;;  %v241_v1 = vld [vmem:[%s190_s18] sm:$0xff]  ;;  %v242_v2 = vld [vmem:[%s190_s18 + $0x8] sm:$0xff] }
  0x61   : > { %s879_s4 = scalar_lea.vmem [#allocation10], %s413_s21  ;;  %s414_s13 = sld [smem:[#allocation4 + $0x1]]  ;;  %v239_v7 = vld [vmem:[%s199_s20] sm:$0xff]  ;;  %v240_v8 = vld [vmem:[%s199_s20 + $0x8] sm:$0xff] }
  0x62   : > { %272 = vst [vmem:[%s879_s4] sm:$0xff] %v663_v0  ;;  %s415_s15 = sld [smem:[#allocation4 + $0x2]]  ;;  %s416_s6 = sld [smem:[#allocation4 + $0x3]] }
  0x63   : > { %s297_s16 = sshll.u32 %s879_s4, 4  ;;  %s418_s27 = sshll.u32 %s648_s25, 7  ;;  %s884_s16 = int_to_ptr.vmem [resolvable:$true] %s297_s16 }
  0x64   : > { %s889_s5 = scalar_lea.hbm %s940_s3, %s418_s27  ;;  %s284_s12 = scalar_lea.sflag [#allocation7], %s865_s17 }
  0x65   : > { %s568_s19 = scalar_lea.vmem %s884_s16, 128  ;;  %p951_p6 = scmp.ne.s32.totalorder %s945_s7, 0 }
  0x66   : > { %v246_v4 = vstv %s235_s30  ;;  %p569_p3 = scmp.ne.s32.totalorder %s884_s16, %s568_s19  ;;  %s664_s25 = smov [#allocation10]  }
  0x67   : > { %v243_v3 = vstv %s414_s13  ;;  %s572_s14 = sshll.u32 %s664_s25, 4  ;;  %s573_s14 = int_to_ptr.vmem [resolvable:$false] %s572_s14 }
  0x68   : > { %v244_v5 = vmul.f32 %v243_v3, %v241_v1  ;;  %v245_v6 = vmul.f32 %v243_v3, %v242_v2  ;;  %v255_v13 = vstv %s415_s15  ;;  %v262_v19 = vstv %s416_s6  ;;  %p570_p1 = pnand %p569_p3, %p951_p6  ;;  %s574_s18 = scalar_lea.vmem %s573_s14, 256 }
  0x69   : > { %p575_p10 = scmp.lt.s32.totalorder %s884_s16, %s573_s14  ;;  %p576_p13 = scmp.lt.s32.totalorder %s574_s18, %s568_s19 }
  0x6a   : > { %v247_v9 = vadd.f32 %v246_v4, %v244_v5  ;;  %v248_v10 = vadd.f32 %v246_v4, %v245_v6  ;;  %p571_p2 = pneg %p570_p1 }
  0x6b   : > { %p577_p12 = por %p576_p13, %p575_p10 }
  0x6c   : > { %v249_v11 = vsub.f32 %v239_v7, %v247_v9  ;;  %v250_v12 = vsub.f32 %v240_v8, %v248_v10 }
  0x6d   : > { %p578_p0 = pnand %p577_p12, %p571_p2 }
  0x6e   : > { %v253_v14 = vmul.f32 %v249_v11, %v249_v11  ;;  %v254_v15 = vmul.f32 %v250_v12, %v250_v12 }
  0x70   : > { %v256_v16 = vadd.f32 %v255_v13, %v253_v14  ;;  %v257_v17 = vadd.f32 %v255_v13, %v254_v15 }
  0x72   : > { %494 = vlog2.f32 %v256_v16 }
  0x73   : > { %496 = vlog2.f32 %v257_v17 }
  0x7c   : > { %v495_v18 = vpop.eup %494 }
  0x7d   : > { %v497_v20 = vpop.eup %496  ;;  %v259_v21 = vmul.f32 0.6931472, %v495_v18 }
  0x7e   : > { %v261_v22 = vmul.f32 0.6931472, %v497_v20 }
  0x7f   : > { %v263_v23 = vmul.f32 %v262_v19, %v259_v21 }
  0x80   : > { %v264_v24 = vmul.f32 %v262_v19, %v261_v22 }
  0x82   : > { %v275_v25 = vadd.f32 %v264_v24, %v263_v23 }
  0x84   : > { %v276_v26 = vrot.slane %v275_v25, 4 }
  0x86   : > { %v277_v27 = vadd.f32 %v276_v26, %v275_v25 }
  0x88   : > { %v278_v28 = vrot.slane %v277_v27, 2 }
  0x8a   : > { %v279_v29 = vadd.f32 %v278_v28, %v277_v27 }
  0x8c   : > { %v280_v30 = vrot.slane %v279_v29, 1 }
  0x8e   : > { %v281_v31 = vadd.f32 %v280_v30, %v279_v29 }
  0x90   : > { %282 = vst [vmem:[%s879_s4] sm:$0x1] %v281_v31 }
  0x91   : > { %581 = shalt.err (!%p578_p0)
}
  0x92   : > { %s582_s17 = scalar_lea.hbm %s889_s5, 128  ;;  %s586_s21 = scalar_lea.hbm %s940_s3, 256 }
  0x93   : > { %p583_p4 = scmp.ne.s32.totalorder %s889_s5, %s582_s17  ;;  %p587_p8 = scmp.lt.u32.totalorder %s889_s5, %s940_s3 }
  0x94   : > { %p588_p7 = scmp.lt.u32.totalorder %s586_s21, %s582_s17  ;;  %p590_p3 = scmp.lt.u32.totalorder %s582_s17, %s889_s5 }
  0x95   : > { %p584_p9 = pnand %p583_p4, %p951_p6 }
  0x96   : > { %p589_p11 = por %p588_p7, %p587_p8 }
  0x97   : > { %p585_p5 = pneg %p584_p9 }
  0x98   : > { %p591_p1 = por %p590_p3, %p589_p11 }
  0x9a   : > { %p592_p2 = pnand %p591_p1, %p585_p5 }
  0x9c   : > { %595 = shalt.err (!%p592_p2)
}
  0x9d   : > { %427 = dma.vmem_to_hbm [thread:$0]  (%p951_p6), %s884_s16, 128, %s889_s5, %s284_s12  }
  0x9e PF: > { %s309_s13 = sand.u32 1, %s636_s22   ;;  %p952_p10 = scmp.ne.s32.totalorder %s946_s9, 0 }
  0x9f   : > { %p953_p13 = scmp.ge.s32.totalorder %s656_s0, 2  ;;  %s310_s15 = scalar_lea.sflag [#allocation7], %s309_s13 }
  0xa1   : > { %p437_p12 = pnand %p953_p13, %p952_p10 }
  0xa3   : > { %631 = dma.done.wait (!%p437_p12), %s310_s15, 128  }
  0xa4   : > { %633 = vsyncadd (!%p437_p12), %s310_s15, 4294967168  ;;  %s26_s0 = sadd.s32 1, %s656_s0   ;;  %s954_s22 = smov %s640_s23 }
  0xa5   : > { %p23_p0 = scmp.ge.s32.totalorder %s26_s0, 4   ;;  %s955_s23 = smov %s644_s24 }
  0xa6   : > { %s956_s24 = smov %s753_s8  ;;  %s957_s25 = smov %s652_s26 }
  0xa7   : > { %s958_s26 = smov %s960_s29  ;;  %25 = sbr.rel (!%p23_p0) target bundleno = 20 (0x14), region = 94 }
  0xae   :  { %315 = vsyncpa [#allocation6], 1 }
  0xaf   :  { %317 = vsyncpa [#allocation6 + $0x1], 1 }
  0xb0   :  { %318 = vsyncpa [#allocation9], 1 }
  0xb1   :  { %320 = vsyncpa [#allocation9 + $0x1], 1 }
  0xb2   :  { %321 = vsyncpa [#allocation7], 1 }
  0xb3   :  { %323 = vsyncpa [#allocation7 + $0x1], 1 }

</bundles_post_ra>
